<compile_context>
chip_gen: v5e
topology: v5e:2x2
jax: 0.10.0
libtpu: 0.0.40
codegen_flags: <defaults>
</compile_context>

<pallas_src>
import jax
import jax.numpy as jnp
from jax.experimental import pallas as pl
from jax.experimental.pallas import tpu as pltpu

BN_EPS = 1e-5
PAD = 128                 # lane width of the fused state / output slabs
WDT = jnp.bfloat16        # dtype of streamed weights + matmul LHS casts


# ---------------------------------------------------------------------------
# Fused forward kernel (whole causal graph, one invocation, no grid).
# ---------------------------------------------------------------------------
def make_fused_kernel(plan, num_hidden, batch, n_params_per_mech,
                      zero_init_preds):
    """Ref layout: src(B,PAD), do(B,n_do), per-mechanism params..., x_out,
    preds_out.  `plan` is static per-variable metadata in topological order."""

    def kernel(*refs):
        src_ref, do_ref = refs[0], refs[1]
        x_ref, preds_ref = refs[-2], refs[-1]
        params = refs[2:-2]

        B = batch
        inv_n = 1.0 / B
        lane = jax.lax.broadcasted_iota(jnp.int32, (B, PAD), 1)
        lane_f = lane.astype(jnp.float32)

        if zero_init_preds:
            preds_ref[...] = jnp.zeros(preds_ref.shape, preds_ref.dtype)

        src = src_ref[...]                            # (B,PAD): z ++ expanded vars
        xcols = jnp.zeros((B, PAD), jnp.float32)      # generated x columns

        for step in plan:                             # static graph -> unrolled
            off = step['exp_off']
            vid = step['id']
            dim = step['dim']
            cat = step['categorical']

            if step['do_col'] is not None:            # ----- do-intervention
                val = do_ref[:, step['do_col']:step['do_col'] + 1]   # (B,1)
                xcols = jnp.where(lane == vid, val, xcols)
                if cat:   # downstream parents see the one-hot of the do value
                    idx = val.astype(jnp.int32).astype(jnp.float32)  # trunc
                    in_rng = (lane >= off) & (lane < off + dim)
                    oh = (lane_f == idx + float(off)).astype(jnp.float32)
                    src = jnp.where(in_rng, oh, src)
                else:
                    src = jnp.where(lane == off, val, src)
                continue

            # ----- mechanism MLP ------------------------------------------
            s = step['param_slot'] * n_params_per_mech
            p = params[s: s + n_params_per_mech]
            h = src
            for l in range(num_hidden):
                w, b, g, be = p[4 * l: 4 * l + 4]
                h = jnp.tanh(jnp.dot(h.astype(WDT), w[...],
                                     preferred_element_type=jnp.float32)
                             + b[...])
                # BatchNorm1d, training-mode batch stats, biased variance.
                # One-pass E[h^2]-mu^2 is safe here because |h|<=1 after tanh
                # so cancellation error (~1e-7) << BN_EPS; keep the 0-clamp.
                mu = jnp.sum(h, axis=0, keepdims=True) * inv_n
                ex2 = jnp.sum(h * h, axis=0, keepdims=True) * inv_n
                var = jnp.maximum(ex2 - mu * mu, 0.0)
                h = (h - mu) * jax.lax.rsqrt(var + BN_EPS) * g[...] + be[...]
            wo, bo = p[4 * num_hidden], p[4 * num_hidden + 1]
            pred = jnp.dot(h.astype(WDT), wo[...],
                           preferred_element_type=jnp.float32) + bo[...]  # (B,PAD)

            if cat:                                   # in-kernel argmax
                preds_ref[step['pred_slot']] = pred
                masked = jnp.where(lane < dim, pred, -jnp.inf)
                mx = jnp.max(masked, axis=1, keepdims=True)
                idx = jnp.min(jnp.where(masked == mx, lane_f, float(PAD)),
                              axis=1, keepdims=True)  # first max (argmax tie rule)
                xcols = jnp.where(lane == vid, idx, xcols)
                in_rng = (lane >= off) & (lane < off + dim)
                oh = (lane_f == idx + float(off)).astype(jnp.float32)
                src = jnp.where(in_rng, oh, src)
            else:
                val = pred[:, 0:1]
                xcols = jnp.where(lane == vid, val, xcols)
                src = jnp.where(lane == off, val, src)

        x_ref[...] = xcols

    return kernel


# ---------------------------------------------------------------------------
# Parameter init (nn.Linear default U(-1/sqrt(fan_in), +); BN gamma=1 beta=0).
# ---------------------------------------------------------------------------
def _init_linear(key, fan_in, fan_out):
    bound = 1.0 / float(fan_in) ** 0.5
    kw, kb = jax.random.split(key)
    w = jax.random.uniform(kw, (fan_in, fan_out), jnp.float32, -bound, bound)
    b = jax.random.uniform(kb, (1, fan_out), jnp.float32, -bound, bound)
    return w, b


class ForwardGeneratorPallas:
    """Pallas port of ForwardGenerator.forward (training-mode BatchNorm)."""

    def __init__(self, variable_dict, topo_sorted, parents, hidden_dims,
                 num_latents, key):
        assert len(hidden_dims) >= 1
        self.variable_dict = variable_dict
        self.topo_sorted = list(topo_sorted)
        self.parents = parents
        self.hidden_dims = list(hidden_dims)
        self.num_hidden = len(hidden_dims)
        self.num_vars = len(variable_dict)
        self.num_latents = int(num_latents)
        assert self.num_vars <= PAD

        # Lane offsets of each variable's "expanded" value inside the fused
        # (B,128) source state (one-hot lanes for categorical, one lane for
        # continuous).  Lanes [0, num_latents) hold z.
        self.exp_off, cur = {}, self.num_latents
        for v in self.topo_sorted:
            vd = variable_dict[v]
            self.exp_off[v] = cur
            cur += vd['dim'] if vd['type'] == 'categorical' else 1
        assert cur <= PAD, "latents + expanded variables must fit in 128 lanes"
        # TODO(synk): support >128 expanded lanes with a second source slab.
        # TODO(synk): for large batches, add a batch-tiled "parallel" grid axis
        # so v7x's two TensorCores both get work (pointless at B=8).

        # --- parameters: natural-size f32 (reference) + kernel versions -----
        keys = jax.random.split(key, len(self.topo_sorted))
        self.nat_params, self.kernel_params = {}, {}
        for i, v in enumerate(self.topo_sorted):
            vd = variable_dict[v]
            dims = [vd['full_parent_dim']] + self.hidden_dims
            lks = jax.random.split(keys[i], self.num_hidden + 1)
            nat, kern = [], []
            for l, h in enumerate(self.hidden_dims):
                w, b = _init_linear(lks[l], dims[l], h)
                g = jnp.ones((1, h), jnp.float32)
                be = jnp.zeros((1, h), jnp.float32)
                nat += [w, b, g, be]
                wk = self._fold_first_layer(v, w) if l == 0 else w
                kern += [wk.astype(WDT), b, g, be]
            wo, bo = _init_linear(lks[-1], self.hidden_dims[-1], vd['dim'])
            nat += [wo, bo]
            wo_p = jnp.zeros((self.hidden_dims[-1], PAD), jnp.float32)
            wo_p = wo_p.at[:, :vd['dim']].set(wo)
            bo_p = jnp.zeros((1, PAD), jnp.float32).at[:, :vd['dim']].set(bo)
            kern += [wo_p.astype(WDT), bo_p]
            self.nat_params[v] = nat
            self.kernel_params[v] = kern

        self._compiled = {}

    def _fold_first_layer(self, v, w1):
        """Re-index W1 rows from [latents ++ parent features] onto the lanes
        of the fused source state, so src @ W1_fold == inp @ W1 exactly."""
        vd = self.variable_dict[v]
        wf = jnp.zeros((PAD, w1.shape[1]), jnp.float32)
        for j, lid in enumerate(vd['latent_ids']):
            wf = wf.at[lid].set(w1[j])
        r = len(vd['latent_ids'])
        for p in self.parents[v]:
            pd_ = self.variable_dict[p]
            ed = pd_['dim'] if pd_['type'] == 'categorical' else 1
            wf = wf.at[self.exp_off[p]:self.exp_off[p] + ed].set(w1[r:r + ed])
            r += ed
        assert r == vd['full_parent_dim']
        return wf

    # ------------------------------------------------------------------
    def _build(self, do_keys):
        plan, mech_vars, pred_vars = [], [], []
        for v in self.topo_sorted:
            vd = self.variable_dict[v]
            cat = vd['type'] == 'categorical'
            step = dict(id=vd['id'], dim=vd['dim'], categorical=cat,
                        exp_off=self.exp_off[v], do_col=None,
                        param_slot=None, pred_slot=None)
            if v in do_keys:
                step['do_col'] = do_keys.index(v)
            else:
                step['param_slot'] = len(mech_vars)
                mech_vars.append(v)
                if cat:
                    step['pred_slot'] = len(pred_vars)
                    pred_vars.append(v)
            plan.append(step)

        n_params_per_mech = 4 * self.num_hidden + 2
        n_pred_slots = max(1, len(pred_vars))
        zero_init_preds = len(pred_vars) == 0
        num_vars, num_hidden = self.num_vars, self.num_hidden
        hd = self.hidden_dims
        pred_dims = [self.variable_dict[v]['dim'] for v in pred_vars]

        @jax.jit
        def fwd(z, do_mat, flat_params):
            B = z.shape[0]
            src0 = jnp.pad(z.astype(jnp.float32),
                           ((0, 0), (0, PAD - z.shape[1])))
            kernel = make_fused_kernel(plan, num_hidden, B,
                                       n_params_per_mech, zero_init_preds)
            n_mech = len(mech_vars)
            flops = int(2 * B * n_mech *
                        (PAD * hd[0]
                         + sum(hd[l - 1] * hd[l] for l in range(1, len(hd)))
                         + hd[-1] * PAD))
            trans = int(n_mech * (B + 1) * sum(hd))          # tanh + rsqrt
            bytes_accessed = int(
                src0.size * 4 + do_mat.size * 4
                + sum(p.size * p.dtype.itemsize for p in flat_params)
                + (1 + n_pred_slots) * B * PAD * 4)
            x_full, preds = pl.pallas_call(
                kernel,
                out_shape=(jax.ShapeDtypeStruct((B, PAD), jnp.float32),
                           jax.ShapeDtypeStruct((n_pred_slots, B, PAD),
                                                jnp.float32)),
                compiler_params=pltpu.CompilerParams(
                    vmem_limit_bytes=32 * 1024 * 1024),
                cost_estimate=pl.CostEstimate(
                    flops=flops, transcendentals=trans,
                    bytes_accessed=bytes_accessed),
            )(src0, do_mat, *flat_params)
            x = x_full[:, :num_vars]
            logits = tuple(preds[i, :, :d] for i, d in enumerate(pred_dims))
            return x, logits

        return fwd, mech_vars, pred_vars

    # ------------------------------------------------------------------
    def __call__(self, z, do_vals=None):
        do_vals = dict(do_vals or {})
        do_keys = tuple(sorted(do_vals))
        if do_keys not in self._compiled:
            self._compiled[do_keys] = self._build(do_keys)
        fwd, mech_vars, _ = self._compiled[do_keys]

        B = z.shape[0]
        if do_keys:
            do_mat = jnp.stack(
                [jnp.broadcast_to(
                    jnp.asarray(do_vals[k], jnp.float32).reshape(-1), (B,))
                 for k in do_keys], axis=1)
        else:
            do_mat = jnp.zeros((B, 1), jnp.float32)
        flat_params = [p for v in mech_vars for p in self.kernel_params[v]]
        x, logits = fwd(z, do_mat, flat_params)

        x_one_hot, ci = {}, 0
        for v in self.topo_sorted:
            if v in do_keys:
                continue
            if self.variable_dict[v]['type'] == 'categorical':
                x_one_hot[v] = logits[ci]
                ci += 1
            else:
                x_one_hot[v] = None
        return x, x_one_hot


# ---------------------------------------------------------------------------
# Pure-JAX reference (mirrors the bf16 matmul-operand casts so the tolerance
# only covers MXU-vs-XLA accumulation order, rare bf16 rounding-boundary
# flips, and the one-pass BN variance).
# ---------------------------------------------------------------------------
def _ref_mechanism(inp, nat_params, num_hidden):
    hi = jax.lax.Precision.HIGHEST
    h = inp
    for l in range(num_hidden):
        w, b, g, be = nat_params[4 * l: 4 * l + 4]
        h = jnp.tanh(jnp.dot(h.astype(WDT), w.astype(WDT), precision=hi,
                             preferred_element_type=jnp.float32) + b)
        mu = jnp.mean(h, axis=0, keepdims=True)
        var = jnp.mean((h - mu) ** 2, axis=0, keepdims=True)
        h = (h - mu) * jax.lax.rsqrt(var + BN_EPS) * g + be
    wo, bo = nat_params[4 * num_hidden: 4 * num_hidden + 2]
    return jnp.dot(h.astype(WDT), wo.astype(WDT), precision=hi,
                   preferred_element_type=jnp.float32) + bo


def _ref_input(z, x, v, variable_dict, parents):
    vd = variable_dict[v]
    feats = [z[:, jnp.array(vd['latent_ids'])]]
    for p in parents[v]:
        pd_ = variable_dict[p]
        pcol = x[:, pd_['id']]
        if pd_['type'] == 'categorical':
            feats.append(jax.nn.one_hot(pcol.astype(jnp.int32), pd_['dim'],
                                        dtype=jnp.float32))
        else:
            feats.append(pcol[:, None])
    return jnp.concatenate(feats, axis=1)


# ---------------------------------------------------------------------------
# Synthetic causal graph + demo
# ---------------------------------------------------------------------------
if __name__ == "__main__":
    # graph: a -> b, {a, b} -> c ; 2 latent dims per variable
    topo_sorted = ['a', 'b', 'c']
    parents = {'a': [], 'b': ['a'], 'c': ['a', 'b']}
    variable_dict = {
        'a': dict(id=0, dim=1, type='continuous', latent_ids=[0, 1],
                  full_parent_dim=2),
        'b': dict(id=1, dim=3, type='categorical', latent_ids=[2, 3],
                  full_parent_dim=3),   # 2 latents + 1 continuous parent
        'c': dict(id=2, dim=1, type='continuous', latent_ids=[4, 5],
                  full_parent_dim=6),   # 2 latents + 1 cont + 3 one-hot
    }
    hidden_dims = [32, 32]
    num_hidden = len(hidden_dims)
    B, NZ = 8, 6

    key = jax.random.PRNGKey(0)
    kz, kp = jax.random.split(key)
    z = jax.random.normal(kz, (B, NZ), jnp.float32)

    gen = ForwardGeneratorPallas(variable_dict, topo_sorted, parents,
                                 hidden_dims, NZ, kp)

    # --- observational forward pass ---------------------------------------
    x, x_one_hot = gen(z)
    x = jax.block_until_ready(x)
    for val in x_one_hot.values():
        if val is not None:
            jax.block_until_ready(val)

    assert x.shape == (B, 3)
    assert x_one_hot['b'].shape == (B, 3)
    assert x_one_hot['a'] is None and x_one_hot['c'] is None

    # Numerical check vs. the pure-JAX reference.  Each mechanism is fed the
    # same (already generated) parent values, so discrete argmax ties cannot
    # cascade; tolerance (derived for the bf16 matmul-operand path) covers
    # MXU-vs-XLA accumulation order, <=1-ulp bf16 activation-rounding flips,
    # and the ~1e-7 one-pass BN variance error.
    for v in topo_sorted:
        vd = variable_dict[v]
        inp = _ref_input(z, x, v, variable_dict, parents)
        ref = _ref_mechanism(inp, gen.nat_params[v], num_hidden)[:, :vd['dim']]
        if vd['type'] == 'categorical':
            err = float(jnp.max(jnp.abs(ref - x_one_hot[v])))
        else:
            err = float(jnp.max(jnp.abs(ref[:, 0] - x[:, vd['id']])))
        assert err < 2e-2, f"mechanism {v}: max abs err {err}"

    # --- interventional forward pass: do(b = 1) ----------------------------
    do_b = jnp.ones((B,), jnp.float32)
    x_do, one_hot_do = gen(z, {'b': do_b})
    x_do = jax.block_until_ready(x_do)
    assert bool(jnp.all(x_do[:, variable_dict['b']['id']] == 1.0))
    assert 'b' not in one_hot_do
    # 'a' is upstream of the intervention -> unchanged
    assert bool(jnp.allclose(x_do[:, variable_dict['a']['id']],
                             x[:, variable_dict['a']['id']]))

    print("KERNEL_OK")
</pallas_src>

<mosaic_0001>
module attributes {stable_mosaic.version = 11 : i64} {
  func.func @kernel(%arg0: memref<8x128xf32, #tpu.memory_space<vmem>>, %arg1: memref<8x1xf32, #tpu.memory_space<vmem>>, %arg2: memref<128x32xbf16, #tpu.memory_space<vmem>>, %arg3: memref<1x32xf32, #tpu.memory_space<vmem>>, %arg4: memref<1x32xf32, #tpu.memory_space<vmem>>, %arg5: memref<1x32xf32, #tpu.memory_space<vmem>>, %arg6: memref<32x32xbf16, #tpu.memory_space<vmem>>, %arg7: memref<1x32xf32, #tpu.memory_space<vmem>>, %arg8: memref<1x32xf32, #tpu.memory_space<vmem>>, %arg9: memref<1x32xf32, #tpu.memory_space<vmem>>, %arg10: memref<32x128xbf16, #tpu.memory_space<vmem>>, %arg11: memref<1x128xf32, #tpu.memory_space<vmem>>, %arg12: memref<128x32xbf16, #tpu.memory_space<vmem>>, %arg13: memref<1x32xf32, #tpu.memory_space<vmem>>, %arg14: memref<1x32xf32, #tpu.memory_space<vmem>>, %arg15: memref<1x32xf32, #tpu.memory_space<vmem>>, %arg16: memref<32x32xbf16, #tpu.memory_space<vmem>>, %arg17: memref<1x32xf32, #tpu.memory_space<vmem>>, %arg18: memref<1x32xf32, #tpu.memory_space<vmem>>, %arg19: memref<1x32xf32, #tpu.memory_space<vmem>>, %arg20: memref<32x128xbf16, #tpu.memory_space<vmem>>, %arg21: memref<1x128xf32, #tpu.memory_space<vmem>>, %arg22: memref<128x32xbf16, #tpu.memory_space<vmem>>, %arg23: memref<1x32xf32, #tpu.memory_space<vmem>>, %arg24: memref<1x32xf32, #tpu.memory_space<vmem>>, %arg25: memref<1x32xf32, #tpu.memory_space<vmem>>, %arg26: memref<32x32xbf16, #tpu.memory_space<vmem>>, %arg27: memref<1x32xf32, #tpu.memory_space<vmem>>, %arg28: memref<1x32xf32, #tpu.memory_space<vmem>>, %arg29: memref<1x32xf32, #tpu.memory_space<vmem>>, %arg30: memref<32x128xbf16, #tpu.memory_space<vmem>>, %arg31: memref<1x128xf32, #tpu.memory_space<vmem>>, %arg32: memref<8x128xf32, #tpu.memory_space<vmem>>, %arg33: memref<1x8x128xf32, #tpu.memory_space<vmem>>) attributes {dimension_semantics = [], scalar_prefetch = 0 : i64, scratch_operands = 0 : i64, tpu.core_type = #tpu.core_type<tc>} {
    %0 = tpu.iota {dimensions = array<i32: 1>} : vector<8x128xi32>
    %1 = arith.sitofp %0 : vector<8x128xi32> to vector<8x128xf32>
    %c0 = arith.constant 0 : index
    %c0_0 = arith.constant 0 : index
    %2 = vector.load %arg0[%c0, %c0_0] : memref<8x128xf32, #tpu.memory_space<vmem>>, vector<8x128xf32>
    %cst = arith.constant 0.000000e+00 : f32
    %3 = vector.broadcast %cst : f32 to vector<8x128xf32>
    %4 = arith.truncf %2 : vector<8x128xf32> to vector<8x128xbf16>
    %c0_1 = arith.constant 0 : index
    %c0_2 = arith.constant 0 : index
    %5 = vector.load %arg2[%c0_1, %c0_2] : memref<128x32xbf16, #tpu.memory_space<vmem>>, vector<128x32xbf16>
    %cst_3 = arith.constant dense<0.000000e+00> : vector<8x32xf32>
    %6 = tpu.matmul %4, %5, %cst_3 {dimension_numbers = #tpu.dot_dimension_numbers<[1], [0], [0], [1], [0, 0, 1, 1], [], []>} : vector<8x128xbf16>, vector<128x32xbf16>, vector<8x32xf32> -> vector<8x32xf32>
    %c0_4 = arith.constant 0 : index
    %c0_5 = arith.constant 0 : index
    %7 = vector.load %arg3[%c0_4, %c0_5] : memref<1x32xf32, #tpu.memory_space<vmem>>, vector<1x32xf32>
    %8 = vector.broadcast %7 : vector<1x32xf32> to vector<8x32xf32>
    %9 = arith.addf %6, %8 : vector<8x32xf32>
    %10 = math.tanh %9 : vector<8x32xf32>
    %cst_6 = arith.constant dense<0.000000e+00> : vector<32xf32>
    %11 = vector.multi_reduction <add>, %10, %cst_6 [0] : vector<8x32xf32> to vector<32xf32>
    %12 = vector.shape_cast %11 : vector<32xf32> to vector<1x32xf32>
    %cst_7 = arith.constant 1.250000e-01 : f32
    %13 = vector.broadcast %cst_7 : f32 to vector<1x32xf32>
    %14 = arith.mulf %12, %13 : vector<1x32xf32>
    %15 = arith.mulf %10, %10 : vector<8x32xf32>
    %cst_8 = arith.constant dense<0.000000e+00> : vector<32xf32>
    %16 = vector.multi_reduction <add>, %15, %cst_8 [0] : vector<8x32xf32> to vector<32xf32>
    %17 = vector.shape_cast %16 : vector<32xf32> to vector<1x32xf32>
    %cst_9 = arith.constant 1.250000e-01 : f32
    %18 = vector.broadcast %cst_9 : f32 to vector<1x32xf32>
    %19 = arith.mulf %17, %18 : vector<1x32xf32>
    %20 = arith.mulf %14, %14 : vector<1x32xf32>
    %21 = arith.subf %19, %20 : vector<1x32xf32>
    %cst_10 = arith.constant 0.000000e+00 : f32
    %22 = vector.broadcast %cst_10 : f32 to vector<1x32xf32>
    %23 = arith.maximumf %21, %22 : vector<1x32xf32>
    %24 = vector.broadcast %14 : vector<1x32xf32> to vector<8x32xf32>
    %25 = arith.subf %10, %24 : vector<8x32xf32>
    %cst_11 = arith.constant 9.99999974E-6 : f32
    %26 = vector.broadcast %cst_11 : f32 to vector<1x32xf32>
    %27 = arith.addf %23, %26 : vector<1x32xf32>
    %28 = math.rsqrt %27 : vector<1x32xf32>
    %29 = vector.broadcast %28 : vector<1x32xf32> to vector<8x32xf32>
    %30 = arith.mulf %25, %29 : vector<8x32xf32>
    %c0_12 = arith.constant 0 : index
    %c0_13 = arith.constant 0 : index
    %31 = vector.load %arg4[%c0_12, %c0_13] : memref<1x32xf32, #tpu.memory_space<vmem>>, vector<1x32xf32>
    %32 = vector.broadcast %31 : vector<1x32xf32> to vector<8x32xf32>
    %33 = arith.mulf %30, %32 : vector<8x32xf32>
    %c0_14 = arith.constant 0 : index
    %c0_15 = arith.constant 0 : index
    %34 = vector.load %arg5[%c0_14, %c0_15] : memref<1x32xf32, #tpu.memory_space<vmem>>, vector<1x32xf32>
    %35 = vector.broadcast %34 : vector<1x32xf32> to vector<8x32xf32>
    %36 = arith.addf %33, %35 : vector<8x32xf32>
    %37 = arith.truncf %36 : vector<8x32xf32> to vector<8x32xbf16>
    %c0_16 = arith.constant 0 : index
    %c0_17 = arith.constant 0 : index
    %38 = vector.load %arg6[%c0_16, %c0_17] : memref<32x32xbf16, #tpu.memory_space<vmem>>, vector<32x32xbf16>
    %cst_18 = arith.constant dense<0.000000e+00> : vector<8x32xf32>
    %39 = tpu.matmul %37, %38, %cst_18 {dimension_numbers = #tpu.dot_dimension_numbers<[1], [0], [0], [1], [0, 0, 1, 1], [], []>} : vector<8x32xbf16>, vector<32x32xbf16>, vector<8x32xf32> -> vector<8x32xf32>
    %c0_19 = arith.constant 0 : index
    %c0_20 = arith.constant 0 : index
    %40 = vector.load %arg7[%c0_19, %c0_20] : memref<1x32xf32, #tpu.memory_space<vmem>>, vector<1x32xf32>
    %41 = vector.broadcast %40 : vector<1x32xf32> to vector<8x32xf32>
    %42 = arith.addf %39, %41 : vector<8x32xf32>
    %43 = math.tanh %42 : vector<8x32xf32>
    %cst_21 = arith.constant dense<0.000000e+00> : vector<32xf32>
    %44 = vector.multi_reduction <add>, %43, %cst_21 [0] : vector<8x32xf32> to vector<32xf32>
    %45 = vector.shape_cast %44 : vector<32xf32> to vector<1x32xf32>
    %cst_22 = arith.constant 1.250000e-01 : f32
    %46 = vector.broadcast %cst_22 : f32 to vector<1x32xf32>
    %47 = arith.mulf %45, %46 : vector<1x32xf32>
    %48 = arith.mulf %43, %43 : vector<8x32xf32>
    %cst_23 = arith.constant dense<0.000000e+00> : vector<32xf32>
    %49 = vector.multi_reduction <add>, %48, %cst_23 [0] : vector<8x32xf32> to vector<32xf32>
    %50 = vector.shape_cast %49 : vector<32xf32> to vector<1x32xf32>
    %cst_24 = arith.constant 1.250000e-01 : f32
    %51 = vector.broadcast %cst_24 : f32 to vector<1x32xf32>
    %52 = arith.mulf %50, %51 : vector<1x32xf32>
    %53 = arith.mulf %47, %47 : vector<1x32xf32>
    %54 = arith.subf %52, %53 : vector<1x32xf32>
    %cst_25 = arith.constant 0.000000e+00 : f32
    %55 = vector.broadcast %cst_25 : f32 to vector<1x32xf32>
    %56 = arith.maximumf %54, %55 : vector<1x32xf32>
    %57 = vector.broadcast %47 : vector<1x32xf32> to vector<8x32xf32>
    %58 = arith.subf %43, %57 : vector<8x32xf32>
    %cst_26 = arith.constant 9.99999974E-6 : f32
    %59 = vector.broadcast %cst_26 : f32 to vector<1x32xf32>
    %60 = arith.addf %56, %59 : vector<1x32xf32>
    %61 = math.rsqrt %60 : vector<1x32xf32>
    %62 = vector.broadcast %61 : vector<1x32xf32> to vector<8x32xf32>
    %63 = arith.mulf %58, %62 : vector<8x32xf32>
    %c0_27 = arith.constant 0 : index
    %c0_28 = arith.constant 0 : index
    %64 = vector.load %arg8[%c0_27, %c0_28] : memref<1x32xf32, #tpu.memory_space<vmem>>, vector<1x32xf32>
    %65 = vector.broadcast %64 : vector<1x32xf32> to vector<8x32xf32>
    %66 = arith.mulf %63, %65 : vector<8x32xf32>
    %c0_29 = arith.constant 0 : index
    %c0_30 = arith.constant 0 : index
    %67 = vector.load %arg9[%c0_29, %c0_30] : memref<1x32xf32, #tpu.memory_space<vmem>>, vector<1x32xf32>
    %68 = vector.broadcast %67 : vector<1x32xf32> to vector<8x32xf32>
    %69 = arith.addf %66, %68 : vector<8x32xf32>
    %70 = arith.truncf %69 : vector<8x32xf32> to vector<8x32xbf16>
    %c0_31 = arith.constant 0 : index
    %c0_32 = arith.constant 0 : index
    %71 = vector.load %arg10[%c0_31, %c0_32] : memref<32x128xbf16, #tpu.memory_space<vmem>>, vector<32x128xbf16>
    %cst_33 = arith.constant dense<0.000000e+00> : vector<8x128xf32>
    %72 = tpu.matmul %70, %71, %cst_33 {dimension_numbers = #tpu.dot_dimension_numbers<[1], [0], [0], [1], [0, 0, 1, 1], [], []>} : vector<8x32xbf16>, vector<32x128xbf16>, vector<8x128xf32> -> vector<8x128xf32>
    %c0_34 = arith.constant 0 : index
    %c0_35 = arith.constant 0 : index
    %73 = vector.load %arg11[%c0_34, %c0_35] : memref<1x128xf32, #tpu.memory_space<vmem>>, vector<1x128xf32>
    %74 = vector.broadcast %73 : vector<1x128xf32> to vector<8x128xf32>
    %75 = arith.addf %72, %74 : vector<8x128xf32>
    %76 = vector.extract_strided_slice %75 {offsets = [0, 0], sizes = [8, 1], strides = [1, 1]} : vector<8x128xf32> to vector<8x1xf32>
    %c0_i32 = arith.constant 0 : i32
    %77 = vector.broadcast %c0_i32 : i32 to vector<8x128xi32>
    %78 = arith.cmpi eq, %0, %77 : vector<8x128xi32>
    %79 = vector.shape_cast %76 : vector<8x1xf32> to vector<8x1xf32>
    %80 = vector.broadcast %79 : vector<8x1xf32> to vector<8x128xf32>
    %81 = arith.select %78, %80, %3 : vector<8x128xi1>, vector<8x128xf32>
    %c6_i32 = arith.constant 6 : i32
    %82 = vector.broadcast %c6_i32 : i32 to vector<8x128xi32>
    %83 = arith.cmpi eq, %0, %82 : vector<8x128xi32>
    %84 = vector.shape_cast %76 : vector<8x1xf32> to vector<8x1xf32>
    %85 = vector.broadcast %84 : vector<8x1xf32> to vector<8x128xf32>
    %86 = arith.select %83, %85, %2 : vector<8x128xi1>, vector<8x128xf32>
    %87 = arith.truncf %86 : vector<8x128xf32> to vector<8x128xbf16>
    %c0_36 = arith.constant 0 : index
    %c0_37 = arith.constant 0 : index
    %88 = vector.load %arg12[%c0_36, %c0_37] : memref<128x32xbf16, #tpu.memory_space<vmem>>, vector<128x32xbf16>
    %cst_38 = arith.constant dense<0.000000e+00> : vector<8x32xf32>
    %89 = tpu.matmul %87, %88, %cst_38 {dimension_numbers = #tpu.dot_dimension_numbers<[1], [0], [0], [1], [0, 0, 1, 1], [], []>} : vector<8x128xbf16>, vector<128x32xbf16>, vector<8x32xf32> -> vector<8x32xf32>
    %c0_39 = arith.constant 0 : index
    %c0_40 = arith.constant 0 : index
    %90 = vector.load %arg13[%c0_39, %c0_40] : memref<1x32xf32, #tpu.memory_space<vmem>>, vector<1x32xf32>
    %91 = vector.broadcast %90 : vector<1x32xf32> to vector<8x32xf32>
    %92 = arith.addf %89, %91 : vector<8x32xf32>
    %93 = math.tanh %92 : vector<8x32xf32>
    %cst_41 = arith.constant dense<0.000000e+00> : vector<32xf32>
    %94 = vector.multi_reduction <add>, %93, %cst_41 [0] : vector<8x32xf32> to vector<32xf32>
    %95 = vector.shape_cast %94 : vector<32xf32> to vector<1x32xf32>
    %cst_42 = arith.constant 1.250000e-01 : f32
    %96 = vector.broadcast %cst_42 : f32 to vector<1x32xf32>
    %97 = arith.mulf %95, %96 : vector<1x32xf32>
    %98 = arith.mulf %93, %93 : vector<8x32xf32>
    %cst_43 = arith.constant dense<0.000000e+00> : vector<32xf32>
    %99 = vector.multi_reduction <add>, %98, %cst_43 [0] : vector<8x32xf32> to vector<32xf32>
    %100 = vector.shape_cast %99 : vector<32xf32> to vector<1x32xf32>
    %cst_44 = arith.constant 1.250000e-01 : f32
    %101 = vector.broadcast %cst_44 : f32 to vector<1x32xf32>
    %102 = arith.mulf %100, %101 : vector<1x32xf32>
    %103 = arith.mulf %97, %97 : vector<1x32xf32>
    %104 = arith.subf %102, %103 : vector<1x32xf32>
    %cst_45 = arith.constant 0.000000e+00 : f32
    %105 = vector.broadcast %cst_45 : f32 to vector<1x32xf32>
    %106 = arith.maximumf %104, %105 : vector<1x32xf32>
    %107 = vector.broadcast %97 : vector<1x32xf32> to vector<8x32xf32>
    %108 = arith.subf %93, %107 : vector<8x32xf32>
    %cst_46 = arith.constant 9.99999974E-6 : f32
    %109 = vector.broadcast %cst_46 : f32 to vector<1x32xf32>
    %110 = arith.addf %106, %109 : vector<1x32xf32>
    %111 = math.rsqrt %110 : vector<1x32xf32>
    %112 = vector.broadcast %111 : vector<1x32xf32> to vector<8x32xf32>
    %113 = arith.mulf %108, %112 : vector<8x32xf32>
    %c0_47 = arith.constant 0 : index
    %c0_48 = arith.constant 0 : index
    %114 = vector.load %arg14[%c0_47, %c0_48] : memref<1x32xf32, #tpu.memory_space<vmem>>, vector<1x32xf32>
    %115 = vector.broadcast %114 : vector<1x32xf32> to vector<8x32xf32>
    %116 = arith.mulf %113, %115 : vector<8x32xf32>
    %c0_49 = arith.constant 0 : index
    %c0_50 = arith.constant 0 : index
    %117 = vector.load %arg15[%c0_49, %c0_50] : memref<1x32xf32, #tpu.memory_space<vmem>>, vector<1x32xf32>
    %118 = vector.broadcast %117 : vector<1x32xf32> to vector<8x32xf32>
    %119 = arith.addf %116, %118 : vector<8x32xf32>
    %120 = arith.truncf %119 : vector<8x32xf32> to vector<8x32xbf16>
    %c0_51 = arith.constant 0 : index
    %c0_52 = arith.constant 0 : index
    %121 = vector.load %arg16[%c0_51, %c0_52] : memref<32x32xbf16, #tpu.memory_space<vmem>>, vector<32x32xbf16>
    %cst_53 = arith.constant dense<0.000000e+00> : vector<8x32xf32>
    %122 = tpu.matmul %120, %121, %cst_53 {dimension_numbers = #tpu.dot_dimension_numbers<[1], [0], [0], [1], [0, 0, 1, 1], [], []>} : vector<8x32xbf16>, vector<32x32xbf16>, vector<8x32xf32> -> vector<8x32xf32>
    %c0_54 = arith.constant 0 : index
    %c0_55 = arith.constant 0 : index
    %123 = vector.load %arg17[%c0_54, %c0_55] : memref<1x32xf32, #tpu.memory_space<vmem>>, vector<1x32xf32>
    %124 = vector.broadcast %123 : vector<1x32xf32> to vector<8x32xf32>
    %125 = arith.addf %122, %124 : vector<8x32xf32>
    %126 = math.tanh %125 : vector<8x32xf32>
    %cst_56 = arith.constant dense<0.000000e+00> : vector<32xf32>
    %127 = vector.multi_reduction <add>, %126, %cst_56 [0] : vector<8x32xf32> to vector<32xf32>
    %128 = vector.shape_cast %127 : vector<32xf32> to vector<1x32xf32>
    %cst_57 = arith.constant 1.250000e-01 : f32
    %129 = vector.broadcast %cst_57 : f32 to vector<1x32xf32>
    %130 = arith.mulf %128, %129 : vector<1x32xf32>
    %131 = arith.mulf %126, %126 : vector<8x32xf32>
    %cst_58 = arith.constant dense<0.000000e+00> : vector<32xf32>
    %132 = vector.multi_reduction <add>, %131, %cst_58 [0] : vector<8x32xf32> to vector<32xf32>
    %133 = vector.shape_cast %132 : vector<32xf32> to vector<1x32xf32>
    %cst_59 = arith.constant 1.250000e-01 : f32
    %134 = vector.broadcast %cst_59 : f32 to vector<1x32xf32>
    %135 = arith.mulf %133, %134 : vector<1x32xf32>
    %136 = arith.mulf %130, %130 : vector<1x32xf32>
    %137 = arith.subf %135, %136 : vector<1x32xf32>
    %cst_60 = arith.constant 0.000000e+00 : f32
    %138 = vector.broadcast %cst_60 : f32 to vector<1x32xf32>
    %139 = arith.maximumf %137, %138 : vector<1x32xf32>
    %140 = vector.broadcast %130 : vector<1x32xf32> to vector<8x32xf32>
    %141 = arith.subf %126, %140 : vector<8x32xf32>
    %cst_61 = arith.constant 9.99999974E-6 : f32
    %142 = vector.broadcast %cst_61 : f32 to vector<1x32xf32>
    %143 = arith.addf %139, %142 : vector<1x32xf32>
    %144 = math.rsqrt %143 : vector<1x32xf32>
    %145 = vector.broadcast %144 : vector<1x32xf32> to vector<8x32xf32>
    %146 = arith.mulf %141, %145 : vector<8x32xf32>
    %c0_62 = arith.constant 0 : index
    %c0_63 = arith.constant 0 : index
    %147 = vector.load %arg18[%c0_62, %c0_63] : memref<1x32xf32, #tpu.memory_space<vmem>>, vector<1x32xf32>
    %148 = vector.broadcast %147 : vector<1x32xf32> to vector<8x32xf32>
    %149 = arith.mulf %146, %148 : vector<8x32xf32>
    %c0_64 = arith.constant 0 : index
    %c0_65 = arith.constant 0 : index
    %150 = vector.load %arg19[%c0_64, %c0_65] : memref<1x32xf32, #tpu.memory_space<vmem>>, vector<1x32xf32>
    %151 = vector.broadcast %150 : vector<1x32xf32> to vector<8x32xf32>
    %152 = arith.addf %149, %151 : vector<8x32xf32>
    %153 = arith.truncf %152 : vector<8x32xf32> to vector<8x32xbf16>
    %c0_66 = arith.constant 0 : index
    %c0_67 = arith.constant 0 : index
    %154 = vector.load %arg20[%c0_66, %c0_67] : memref<32x128xbf16, #tpu.memory_space<vmem>>, vector<32x128xbf16>
    %cst_68 = arith.constant dense<0.000000e+00> : vector<8x128xf32>
    %155 = tpu.matmul %153, %154, %cst_68 {dimension_numbers = #tpu.dot_dimension_numbers<[1], [0], [0], [1], [0, 0, 1, 1], [], []>} : vector<8x32xbf16>, vector<32x128xbf16>, vector<8x128xf32> -> vector<8x128xf32>
    %c0_69 = arith.constant 0 : index
    %c0_70 = arith.constant 0 : index
    %156 = vector.load %arg21[%c0_69, %c0_70] : memref<1x128xf32, #tpu.memory_space<vmem>>, vector<1x128xf32>
    %157 = vector.broadcast %156 : vector<1x128xf32> to vector<8x128xf32>
    %158 = arith.addf %155, %157 : vector<8x128xf32>
    %c0_71 = arith.constant 0 : index
    %c0_72 = arith.constant 0 : index
    %c0_73 = arith.constant 0 : index
    %159 = vector.load %arg33[%c0_71, %c0_72, %c0_73] : memref<1x8x128xf32, #tpu.memory_space<vmem>>, vector<1x8x128xf32>
    %160 = vector.shape_cast %159 : vector<1x8x128xf32> to vector<8x128xf32>
    %161 = vector.shape_cast %158 : vector<8x128xf32> to vector<1x8x128xf32>
    tpu.vector_store %arg33[%c0_71, %c0_72, %c0_73], %161 {strides = array<i32>} : memref<1x8x128xf32, #tpu.memory_space<vmem>>, vector<1x8x128xf32>,
    %c3_i32 = arith.constant 3 : i32
    %162 = vector.broadcast %c3_i32 : i32 to vector<8x128xi32>
    %163 = arith.cmpi slt, %0, %162 : vector<8x128xi32>
    %cst_74 = arith.constant 0xFF800000 : f32
    %164 = vector.broadcast %cst_74 : f32 to vector<8x128xf32>
    %165 = arith.select %163, %158, %164 : vector<8x128xi1>, vector<8x128xf32>
    %cst_75 = arith.constant dense<0xFF800000> : vector<8xf32>
    %166 = vector.multi_reduction <maximumf>, %165, %cst_75 [1] : vector<8x128xf32> to vector<8xf32>
    %167 = vector.shape_cast %166 : vector<8xf32> to vector<8x1xf32>
    %168 = vector.broadcast %167 : vector<8x1xf32> to vector<8x128xf32>
    %169 = arith.cmpf oeq, %165, %168 : vector<8x128xf32>
    %cst_76 = arith.constant 1.280000e+02 : f32
    %170 = vector.broadcast %cst_76 : f32 to vector<8x128xf32>
    %171 = arith.select %169, %1, %170 : vector<8x128xi1>, vector<8x128xf32>
    %cst_77 = arith.constant dense<0x7F800000> : vector<8xf32>
    %172 = vector.multi_reduction <minimumf>, %171, %cst_77 [1] : vector<8x128xf32> to vector<8xf32>
    %173 = vector.shape_cast %172 : vector<8xf32> to vector<8x1xf32>
    %c1_i32 = arith.constant 1 : i32
    %174 = vector.broadcast %c1_i32 : i32 to vector<8x128xi32>
    %175 = arith.cmpi eq, %0, %174 : vector<8x128xi32>
    %176 = vector.shape_cast %173 : vector<8x1xf32> to vector<8x1xf32>
    %177 = vector.broadcast %176 : vector<8x1xf32> to vector<8x128xf32>
    %178 = arith.select %175, %177, %81 : vector<8x128xi1>, vector<8x128xf32>
    %c7_i32 = arith.constant 7 : i32
    %179 = vector.broadcast %c7_i32 : i32 to vector<8x128xi32>
    %180 = arith.cmpi sge, %0, %179 : vector<8x128xi32>
    %c10_i32 = arith.constant 10 : i32
    %181 = vector.broadcast %c10_i32 : i32 to vector<8x128xi32>
    %182 = arith.cmpi slt, %0, %181 : vector<8x128xi32>
    %183 = arith.andi %180, %182 : vector<8x128xi1>
    %cst_78 = arith.constant 7.000000e+00 : f32
    %184 = vector.broadcast %cst_78 : f32 to vector<8x1xf32>
    %185 = arith.addf %173, %184 : vector<8x1xf32>
    %186 = vector.broadcast %185 : vector<8x1xf32> to vector<8x128xf32>
    %187 = arith.cmpf oeq, %1, %186 : vector<8x128xf32>
    %188 = arith.extui %187 : vector<8x128xi1> to vector<8x128xi32>
    %189 = arith.sitofp %188 : vector<8x128xi32> to vector<8x128xf32>
    %190 = arith.select %183, %189, %86 : vector<8x128xi1>, vector<8x128xf32>
    %191 = arith.truncf %190 : vector<8x128xf32> to vector<8x128xbf16>
    %c0_79 = arith.constant 0 : index
    %c0_80 = arith.constant 0 : index
    %192 = vector.load %arg22[%c0_79, %c0_80] : memref<128x32xbf16, #tpu.memory_space<vmem>>, vector<128x32xbf16>
    %cst_81 = arith.constant dense<0.000000e+00> : vector<8x32xf32>
    %193 = tpu.matmul %191, %192, %cst_81 {dimension_numbers = #tpu.dot_dimension_numbers<[1], [0], [0], [1], [0, 0, 1, 1], [], []>} : vector<8x128xbf16>, vector<128x32xbf16>, vector<8x32xf32> -> vector<8x32xf32>
    %c0_82 = arith.constant 0 : index
    %c0_83 = arith.constant 0 : index
    %194 = vector.load %arg23[%c0_82, %c0_83] : memref<1x32xf32, #tpu.memory_space<vmem>>, vector<1x32xf32>
    %195 = vector.broadcast %194 : vector<1x32xf32> to vector<8x32xf32>
    %196 = arith.addf %193, %195 : vector<8x32xf32>
    %197 = math.tanh %196 : vector<8x32xf32>
    %cst_84 = arith.constant dense<0.000000e+00> : vector<32xf32>
    %198 = vector.multi_reduction <add>, %197, %cst_84 [0] : vector<8x32xf32> to vector<32xf32>
    %199 = vector.shape_cast %198 : vector<32xf32> to vector<1x32xf32>
    %cst_85 = arith.constant 1.250000e-01 : f32
    %200 = vector.broadcast %cst_85 : f32 to vector<1x32xf32>
    %201 = arith.mulf %199, %200 : vector<1x32xf32>
    %202 = arith.mulf %197, %197 : vector<8x32xf32>
    %cst_86 = arith.constant dense<0.000000e+00> : vector<32xf32>
    %203 = vector.multi_reduction <add>, %202, %cst_86 [0] : vector<8x32xf32> to vector<32xf32>
    %204 = vector.shape_cast %203 : vector<32xf32> to vector<1x32xf32>
    %cst_87 = arith.constant 1.250000e-01 : f32
    %205 = vector.broadcast %cst_87 : f32 to vector<1x32xf32>
    %206 = arith.mulf %204, %205 : vector<1x32xf32>
    %207 = arith.mulf %201, %201 : vector<1x32xf32>
    %208 = arith.subf %206, %207 : vector<1x32xf32>
    %cst_88 = arith.constant 0.000000e+00 : f32
    %209 = vector.broadcast %cst_88 : f32 to vector<1x32xf32>
    %210 = arith.maximumf %208, %209 : vector<1x32xf32>
    %211 = vector.broadcast %201 : vector<1x32xf32> to vector<8x32xf32>
    %212 = arith.subf %197, %211 : vector<8x32xf32>
    %cst_89 = arith.constant 9.99999974E-6 : f32
    %213 = vector.broadcast %cst_89 : f32 to vector<1x32xf32>
    %214 = arith.addf %210, %213 : vector<1x32xf32>
    %215 = math.rsqrt %214 : vector<1x32xf32>
    %216 = vector.broadcast %215 : vector<1x32xf32> to vector<8x32xf32>
    %217 = arith.mulf %212, %216 : vector<8x32xf32>
    %c0_90 = arith.constant 0 : index
    %c0_91 = arith.constant 0 : index
    %218 = vector.load %arg24[%c0_90, %c0_91] : memref<1x32xf32, #tpu.memory_space<vmem>>, vector<1x32xf32>
    %219 = vector.broadcast %218 : vector<1x32xf32> to vector<8x32xf32>
    %220 = arith.mulf %217, %219 : vector<8x32xf32>
    %c0_92 = arith.constant 0 : index
    %c0_93 = arith.constant 0 : index
    %221 = vector.load %arg25[%c0_92, %c0_93] : memref<1x32xf32, #tpu.memory_space<vmem>>, vector<1x32xf32>
    %222 = vector.broadcast %221 : vector<1x32xf32> to vector<8x32xf32>
    %223 = arith.addf %220, %222 : vector<8x32xf32>
    %224 = arith.truncf %223 : vector<8x32xf32> to vector<8x32xbf16>
    %c0_94 = arith.constant 0 : index
    %c0_95 = arith.constant 0 : index
    %225 = vector.load %arg26[%c0_94, %c0_95] : memref<32x32xbf16, #tpu.memory_space<vmem>>, vector<32x32xbf16>
    %cst_96 = arith.constant dense<0.000000e+00> : vector<8x32xf32>
    %226 = tpu.matmul %224, %225, %cst_96 {dimension_numbers = #tpu.dot_dimension_numbers<[1], [0], [0], [1], [0, 0, 1, 1], [], []>} : vector<8x32xbf16>, vector<32x32xbf16>, vector<8x32xf32> -> vector<8x32xf32>
    %c0_97 = arith.constant 0 : index
    %c0_98 = arith.constant 0 : index
    %227 = vector.load %arg27[%c0_97, %c0_98] : memref<1x32xf32, #tpu.memory_space<vmem>>, vector<1x32xf32>
    %228 = vector.broadcast %227 : vector<1x32xf32> to vector<8x32xf32>
    %229 = arith.addf %226, %228 : vector<8x32xf32>
    %230 = math.tanh %229 : vector<8x32xf32>
    %cst_99 = arith.constant dense<0.000000e+00> : vector<32xf32>
    %231 = vector.multi_reduction <add>, %230, %cst_99 [0] : vector<8x32xf32> to vector<32xf32>
    %232 = vector.shape_cast %231 : vector<32xf32> to vector<1x32xf32>
    %cst_100 = arith.constant 1.250000e-01 : f32
    %233 = vector.broadcast %cst_100 : f32 to vector<1x32xf32>
    %234 = arith.mulf %232, %233 : vector<1x32xf32>
    %235 = arith.mulf %230, %230 : vector<8x32xf32>
    %cst_101 = arith.constant dense<0.000000e+00> : vector<32xf32>
    %236 = vector.multi_reduction <add>, %235, %cst_101 [0] : vector<8x32xf32> to vector<32xf32>
    %237 = vector.shape_cast %236 : vector<32xf32> to vector<1x32xf32>
    %cst_102 = arith.constant 1.250000e-01 : f32
    %238 = vector.broadcast %cst_102 : f32 to vector<1x32xf32>
    %239 = arith.mulf %237, %238 : vector<1x32xf32>
    %240 = arith.mulf %234, %234 : vector<1x32xf32>
    %241 = arith.subf %239, %240 : vector<1x32xf32>
    %cst_103 = arith.constant 0.000000e+00 : f32
    %242 = vector.broadcast %cst_103 : f32 to vector<1x32xf32>
    %243 = arith.maximumf %241, %242 : vector<1x32xf32>
    %244 = vector.broadcast %234 : vector<1x32xf32> to vector<8x32xf32>
    %245 = arith.subf %230, %244 : vector<8x32xf32>
    %cst_104 = arith.constant 9.99999974E-6 : f32
    %246 = vector.broadcast %cst_104 : f32 to vector<1x32xf32>
    %247 = arith.addf %243, %246 : vector<1x32xf32>
    %248 = math.rsqrt %247 : vector<1x32xf32>
    %249 = vector.broadcast %248 : vector<1x32xf32> to vector<8x32xf32>
    %250 = arith.mulf %245, %249 : vector<8x32xf32>
    %c0_105 = arith.constant 0 : index
    %c0_106 = arith.constant 0 : index
    %251 = vector.load %arg28[%c0_105, %c0_106] : memref<1x32xf32, #tpu.memory_space<vmem>>, vector<1x32xf32>
    %252 = vector.broadcast %251 : vector<1x32xf32> to vector<8x32xf32>
    %253 = arith.mulf %250, %252 : vector<8x32xf32>
    %c0_107 = arith.constant 0 : index
    %c0_108 = arith.constant 0 : index
    %254 = vector.load %arg29[%c0_107, %c0_108] : memref<1x32xf32, #tpu.memory_space<vmem>>, vector<1x32xf32>
    %255 = vector.broadcast %254 : vector<1x32xf32> to vector<8x32xf32>
    %256 = arith.addf %253, %255 : vector<8x32xf32>
    %257 = arith.truncf %256 : vector<8x32xf32> to vector<8x32xbf16>
    %c0_109 = arith.constant 0 : index
    %c0_110 = arith.constant 0 : index
    %258 = vector.load %arg30[%c0_109, %c0_110] : memref<32x128xbf16, #tpu.memory_space<vmem>>, vector<32x128xbf16>
    %cst_111 = arith.constant dense<0.000000e+00> : vector<8x128xf32>
    %259 = tpu.matmul %257, %258, %cst_111 {dimension_numbers = #tpu.dot_dimension_numbers<[1], [0], [0], [1], [0, 0, 1, 1], [], []>} : vector<8x32xbf16>, vector<32x128xbf16>, vector<8x128xf32> -> vector<8x128xf32>
    %c0_112 = arith.constant 0 : index
    %c0_113 = arith.constant 0 : index
    %260 = vector.load %arg31[%c0_112, %c0_113] : memref<1x128xf32, #tpu.memory_space<vmem>>, vector<1x128xf32>
    %261 = vector.broadcast %260 : vector<1x128xf32> to vector<8x128xf32>
    %262 = arith.addf %259, %261 : vector<8x128xf32>
    %263 = vector.extract_strided_slice %262 {offsets = [0, 0], sizes = [8, 1], strides = [1, 1]} : vector<8x128xf32> to vector<8x1xf32>
    %c2_i32 = arith.constant 2 : i32
    %264 = vector.broadcast %c2_i32 : i32 to vector<8x128xi32>
    %265 = arith.cmpi eq, %0, %264 : vector<8x128xi32>
    %266 = vector.shape_cast %263 : vector<8x1xf32> to vector<8x1xf32>
    %267 = vector.broadcast %266 : vector<8x1xf32> to vector<8x128xf32>
    %268 = arith.select %265, %267, %178 : vector<8x128xi1>, vector<8x128xf32>
    %c0_114 = arith.constant 0 : index
    %c0_115 = arith.constant 0 : index
    %269 = vector.load %arg32[%c0_114, %c0_115] : memref<8x128xf32, #tpu.memory_space<vmem>>, vector<8x128xf32>
    tpu.vector_store %arg32[%c0_114, %c0_115], %268 {strides = array<i32>} : memref<8x128xf32, #tpu.memory_space<vmem>>, vector<8x128xf32>,
    return
  }
}

</mosaic_0001>

<bundles_post_ra>
// kernel: fwd.1
= control target key start
LH: loop header
LB: loop body
LE: loop exit
PB: predicated region body
PF: predicated region fallthrough
CT: control target
= control target key end

     0   :  { %s1219_s3 = smov 2   ;;  %s1220_s7 = smov 3   ;;  %vm225_vm0 = vcmask 261120   ;;  %s1460_s0 = inlined_call_operand.smem [shape: u32[34], index: -1, kind: input, shape index: {}] }
   0x1   :  { %s919_s6 = sld [smem:[%s1460_s0 + %s1219_s3]]   ;;  %s1221_s14 = smov 4  }
   0x2   :  { %s1264_s10 = sld [smem:[%s1460_s0 + %s1220_s7]]   ;;  %s1222_s18 = smov 5  }
   0x3   :  { %s1_s13 = sld [smem:[%s1460_s0]]   ;;  %s1223_s22 = smov 7  }
   0x4   :  { %s1276_s17 = sld [smem:[%s1460_s0 + %s1221_s14]]   ;;  %s1224_s26 = smov 6  }
   0x5   :  { %s1281_s21 = sld [smem:[%s1460_s0 + %s1222_s18]]   ;;  %s1225_s30 = smov 8  }
   0x6   :  { %s1286_s25 = sld [smem:[%s1460_s0 + %s1223_s22]]   ;;  %s1226_s4 = smov 9  }
   0x7   :  { %v1109_v0 = vld [vmem:[%s919_s6 + $0x38] sm:$0xff]  ;;  %v1108_v1 = vld [vmem:[%s919_s6 + $0x30] sm:$0xff]  ;;  %v1107_v2 = vld [vmem:[%s919_s6 + $0x28] sm:$0xff]  ;;  %s923_s29 = sld [smem:[%s1460_s0 + %s1224_s26]]   ;;  %s1227_s8 = smov 11  }
   0x8   :  { %211 = vmatpush.bf16.msra.mxu0 %v1109_v0  ;;  %v1106_v3 = vld [vmem:[%s919_s6 + $0x20] sm:$0xff]  ;;  %v1105_v4 = vld [vmem:[%s919_s6 + $0x18] sm:$0xff]  ;;  %v1104_v5 = vld [vmem:[%s919_s6 + $0x10] sm:$0xff]  ;;  %s1300_s3 = sld [smem:[%s1460_s0 + %s1225_s30]]   ;;  %s1228_s12 = smov 10  }
   0x9   :  { %v1103_v6 = vld [vmem:[%s919_s6 + $0x8] sm:$0xff]  ;;  %v1102_v7 = vld [vmem:[%s919_s6] sm:$0xff]  ;;  %s1305_s7 = sld [smem:[%s1460_s0 + %s1226_s4]]   ;;  %s1229_s16 = smov 12  }
   0xa   :  { %v1269_v8 = vld [vmem:[%s1_s13] sm:$0xff]  ;;  %s1310_s11 = sld [smem:[%s1460_s0 + %s1227_s8]]   ;;  %s1231_s20 = smov 13  }
   0xb   :  { %v142_v9 = vpack.c.bf16 %v1269_v8, %v1269_v8  ;;  %v1174_v12 = vld [vmem:[%s1264_s10] ss:$0 sm:$0xff]  ;;  %s927_s15 = sld [smem:[%s1460_s0 + %s1228_s12]]   ;;  %s1232_s24 = smov 14  }
   0xc   :  { %212 = vmatpush.bf16.msra.mxu0 %v1108_v1  ;;  %v1175_v45 = vld [vmem:[%s1276_s17] ss:$0 sm:$0xff]  ;;  %s929_s19 = sld [smem:[%s1460_s0 + %s1229_s16]]   ;;  %s1233_s28 = smov 15  }
   0xd   :  { %v1111_v10 = vld [vmem:[%s923_s29 + $0x8] sm:$0xff]  ;;  %v1110_v11 = vld [vmem:[%s923_s29] sm:$0xff]  ;;  %s930_s23 = sld [smem:[%s1460_s0 + %s1231_s20]]   ;;  %s1234_s2 = smov 17  }
   0xe   :  { %299 = vmatpush.bf16.msra.mxu3 %v1111_v10  ;;  %v1176_v48 = vld [vmem:[%s1281_s21] ss:$0 sm:$0xff]  ;;  %s1342_s27 = sld [smem:[%s1460_s0 + %s1232_s24]]   ;;  %s1235_s6 = smov 16  }
   0xf   :  { %v1177_v54 = vld [vmem:[%s1286_s25] ss:$0 sm:$0xff]  ;;  %s1347_s1 = sld [smem:[%s1460_s0 + %s1233_s28]]   ;;  %s1236_s10 = smov 18  }
  0x10   :  { %213 = vmatpush.bf16.msra.mxu0 %v1107_v2  ;;  %s1352_s5 = sld [smem:[%s1460_s0 + %s1234_s2]]   ;;  %s1237_s14 = smov 19  }
  0x11   :  { %v1113_v52 = vld [vmem:[%s927_s15 + $0x8] sm:$0xff]  ;;  %v1112_v53 = vld [vmem:[%s927_s15] sm:$0xff]  ;;  %s933_s9 = sld [smem:[%s1460_s0 + %s1235_s6]]   ;;  %s1238_s18 = smov 21  }
  0x12   :  { %300 = vmatpush.bf16.msra.mxu3 %v1110_v11  ;;  %380 = vmatpush.bf16.msra.mxu2 %v1113_v52  ;;  %s1365_s13 = sld [smem:[%s1460_s0 + %s1236_s10]]   ;;  %s1239_s22 = smov 20  }
  0x13   :  { %s1370_s17 = sld [smem:[%s1460_s0 + %s1237_s14]]   ;;  %s1240_s26 = smov 33  }
  0x14   :  { %214 = vmatpush.bf16.msra.mxu0 %v1106_v3  ;;  %s1375_s21 = sld [smem:[%s1460_s0 + %s1238_s18]]   ;;  %s1241_s30 = smov 22  }
  0x15   :  { %s937_s25 = sld [smem:[%s1460_s0 + %s1239_s22]]   ;;  %s1242_s4 = smov 23  }
  0x16   :  { %381 = vmatpush.bf16.msra.mxu2 %v1112_v53  ;;  %s950_s29 = sld [smem:[%s1460_s0 + %s1240_s26]]   ;;  %s1244_s8 = smov 24  }
  0x17   :  { %s1245_s12 = smov 25   ;;  %s1246_s16 = smov 27  }
  0x18   :  { %215 = vmatpush.bf16.msra.mxu0 %v1105_v4  ;;  %s1412_s15 = sld [smem:[%s1460_s0 + %s1245_s12]]   ;;  %s1247_s20 = smov 26  }
  0x19   :  { %s1248_s24 = smov 28   ;;  %s1249_s28 = smov 29  }
  0x1a   :  { %s1250_s2 = smov 31   ;;  %s1251_s6 = smov 30  }
  0x1b   :  { %s1252_s10 = smov 32  }
  0x1c   :  { %216 = vmatpush.bf16.msra.mxu0 %v1104_v5 }
  0x20   :  { %217 = vmatpush.bf16.msra.mxu0 %v1103_v6 }
  0x24   :  { %218 = vmatpush.bf16.msra.mxu0 %v1102_v7 }
  0x27   :  { %219 = vmatmul.bf16.vlgmr.msra.gmra.mxu0 %v142_v9 }
  0xa4   :  { %v220_v13 = vpop.f32.mrf.mxu0 }
  0xa5   :  { %v221_v14 = vadd.f32 %v1174_v12, %v220_v13 }
  0xa7   :  { %1195 = vtanh.f32 %v221_v14 }
  0xac   :  { %v222_v15 = vpop.f32.mrf.mxu0 }
  0xad   :  { %v1196_v16 = vpop.eup %1195 }
  0xae   :  { %v226_v17 = vsel %vm225_vm0, %v1196_v16, 0.0  ;;  %v234_v18 = vmul.f32 %v1196_v16, %v1196_v16 }
  0xaf   :  { %v227_v19 = vrot.slane %v226_v17, 4 }
  0xb0   :  { %v235_v20 = vsel %vm225_vm0, %v234_v18, 0.0 }
  0xb1   :  { %v236_v21 = vrot.slane %v235_v20, 4  ;;  %v228_v22 = vadd.f32 %v227_v19, %v226_v17 }
  0xb3   :  { %v237_v23 = vadd.f32 %v236_v21, %v235_v20  ;;  %v229_v24 = vrot.slane %v228_v22, 2 }
  0xb5   :  { %v238_v25 = vrot.slane %v237_v23, 2  ;;  %v230_v26 = vadd.f32 %v229_v24, %v228_v22  ;;  %v1178_v24 = vld [vmem:[%s1300_s3] ss:$0 sm:$0xff]  ;;  %s939_s3 = sld [smem:[%s1460_s0 + %s1241_s30]]  }
  0xb7   :  { %v231_v27 = vrot.slane %v230_v26, 1  ;;  %v239_v28 = vadd.f32 %v238_v25, %v237_v23 }
  0xb9   :  { %v232_v29 = vadd.f32 %v231_v27, %v230_v26  ;;  %v240_v30 = vrot.slane %v239_v28, 1  ;;  %v1179_v27 = vld [vmem:[%s1305_s7] ss:$0 sm:$0xff]  ;;  %s940_s7 = sld [smem:[%s1460_s0 + %s1242_s4]]  }
  0xbb   :  { %v233_v31 = vmul.f32 0.125, %v232_v29  ;;  %v241_v32 = vadd.f32 %v240_v30, %v239_v28 }
  0xbd   :  { %v242_v33 = vmul.f32 0.125, %v241_v32  ;;  %v243_v34 = vmul.f32 %v233_v31, %v233_v31  ;;  %v246_v44 = vsub.f32 %v1196_v16, %v233_v31  ;;  %v1230_v31 = vmov 0   ;;  %v1121_v32 = vld [vmem:[%s929_s19 + $0x38] sm:$0xff] }
  0xbe   :  { %1172 = vset.pattern.permute.xlu0 %v1230_v31  ;;  %1173 = vset.pattern.permute.xlu1 %v1230_v31 }
  0xbf   :  { %v244_v35 = vsub.f32 %v242_v33, %v243_v34  ;;  %465 = vmatpush.bf16.msrb.mxu3 %v1121_v32  ;;  %v1120_v33 = vld [vmem:[%s929_s19 + $0x30] sm:$0xff]  ;;  %v1119_v34 = vld [vmem:[%s929_s19 + $0x28] sm:$0xff] }
  0xc1   :  { %v245_v36 = vmax.f32 %v244_v35, 0.0  ;;  %v1118_v35 = vld [vmem:[%s929_s19 + $0x20] sm:$0xff] }
  0xc3   :  { %v247_v37 = vadd.f32 1e-05, %v245_v36  ;;  %466 = vmatpush.bf16.msrb.mxu3 %v1120_v33  ;;  %v1117_v36 = vld [vmem:[%s929_s19 + $0x18] sm:$0xff] }
  0xc5   :  { %1197 = vrsqrt.f32 %v247_v37  ;;  %vm254_vm2 = vweird.f32 %v247_v37 }
  0xc7   :  { %467 = vmatpush.bf16.msrb.mxu3 %v1119_v34 }
  0xcb   :  { %v1198_v38 = vpop.eup %1197  ;;  %468 = vmatpush.bf16.msrb.mxu3 %v1118_v35 }
  0xcc   :  { %v249_v39 = vmul.f32 %v1198_v38, %v247_v37  ;;  %vm255_vm1 = vweird.f32 %v1198_v38  ;;  %v1116_v37 = vld [vmem:[%s929_s19 + $0x10] sm:$0xff] }
  0xcd   :  { %vm256_vm3 = vmor %vm254_vm2, %vm255_vm1 }
  0xce   :  { %v250_v40 = vmul.f32 %v1198_v38, %v249_v39  ;;  %v1115_v39 = vld [vmem:[%s929_s19 + $0x8] sm:$0xff] }
  0xcf   :  { %469 = vmatpush.bf16.msrb.mxu3 %v1117_v36 }
  0xd0   :  { %v251_v41 = vmul.f32 0.5, %v250_v40 }
  0xd2   :  { %v252_v42 = vsub.f32 1.5, %v251_v41 }
  0xd3   :  { %470 = vmatpush.bf16.msrb.mxu3 %v1116_v37 }
  0xd4   :  { %v253_v43 = vmul.f32 %v1198_v38, %v252_v42 }
  0xd6   :  { %v257_v46 = vsel %vm256_vm3, %v1198_v38, %v253_v43  ;;  %v1180_v38 = vld [vmem:[%s1310_s11] ss:$0 sm:$0xff]  ;;  %s1407_s11 = sld [smem:[%s1460_s0 + %s1244_s8]]  }
  0xd7   :  { %v258_v47 = vmul.f32 %v257_v46, %v246_v44  ;;  %471 = vmatpush.bf16.msrb.mxu3 %v1115_v39  ;;  %v1114_v43 = vld [vmem:[%s929_s19] sm:$0xff]  ;;  %v138_v44 = vlaneseq  ;;  %s1417_s19 = sld [smem:[%s1460_s0 + %s1246_s16]]  }
  0xd9   :  { %v263_v49 = vmul.f32 %v1175_v45, %v258_v47  ;;  %v1328_v45 = vand.u32 127, %v138_v44 }
  0xdb   :  { %v268_v50 = vadd.f32 %v1176_v48, %v263_v49  ;;  %472 = vmatpush.bf16.msrb.mxu3 %v1114_v43  ;;  %vm394_vm7 = vcmp.eq.s32.totalorder %v1328_v45, 6  ;;  %v1122_v49 = vld [vmem:[%s933_s9] sm:$0xff]  ;;  %vm641_vm14 = vcmp.lt.s32.totalorder %v1328_v45, 3  ;;  %vm651_vm1 = vcmp.ge.s32.totalorder %v1328_v45, 7 }
  0xdc   :  { %vm652_vm2 = vcmp.lt.s32.totalorder %v1328_v45, 10 }
  0xdd   :  { %v269_v51 = vpack.c.bf16 %v268_v50, %v268_v50  ;;  %v1181_v50 = vld [vmem:[%s930_s23] ss:$0 sm:$0xff]  ;;  %vm653_vm3 = vmand %vm651_vm1, %vm652_vm2  ;;  %s943_s23 = sld [smem:[%s1460_s0 + %s1247_s20]]  }
  0xdf   :  { %991 = vmatmul.msk.bf16.vlgmr.msra.gmra.mxu3 %vm225_vm0, %v269_v51 }
 0x162   :  { %v302_v55 = vpop.f32.mrf.mxu3 }
 0x163   :  { %v303_v56 = vadd.f32 %v1177_v54, %v302_v55 }
 0x165   :  { %1199 = vtanh.f32 %v303_v56 }
 0x16a   :  { %v304_v57 = vpop.f32.mrf.mxu3 }
 0x16b   :  { %v1200_v58 = vpop.eup %1199 }
 0x16c   :  { %v307_v59 = vsel %vm225_vm0, %v1200_v58, 0.0  ;;  %v315_v60 = vmul.f32 %v1200_v58, %v1200_v58 }
 0x16d   :  { %v308_v61 = vrot.slane %v307_v59, 4 }
 0x16e   :  { %v316_v62 = vsel %vm225_vm0, %v315_v60, 0.0 }
 0x16f   :  { %v317_v63 = vrot.slane %v316_v62, 4  ;;  %v309_v0 = vadd.f32 %v308_v61, %v307_v59 }
 0x171   :  { %v318_v1 = vadd.f32 %v317_v63, %v316_v62  ;;  %v310_v2 = vrot.slane %v309_v0, 2 }
 0x173   :  { %v319_v3 = vrot.slane %v318_v1, 2  ;;  %v311_v4 = vadd.f32 %v310_v2, %v309_v0 }
 0x175   :  { %v312_v5 = vrot.slane %v311_v4, 1  ;;  %v320_v6 = vadd.f32 %v319_v3, %v318_v1 }
 0x177   :  { %v313_v7 = vadd.f32 %v312_v5, %v311_v4  ;;  %v321_v9 = vrot.slane %v320_v6, 1 }
 0x179   :  { %v314_v10 = vmul.f32 0.125, %v313_v7  ;;  %v322_v11 = vadd.f32 %v321_v9, %v320_v6 }
 0x17b   :  { %v323_v12 = vmul.f32 0.125, %v322_v11  ;;  %v324_v13 = vmul.f32 %v314_v10, %v314_v10  ;;  %v327_v23 = vsub.f32 %v1200_v58, %v314_v10 }
 0x17d   :  { %v325_v14 = vsub.f32 %v323_v12, %v324_v13 }
 0x17f   :  { %v326_v15 = vmax.f32 %v325_v14, 0.0 }
 0x181   :  { %v328_v16 = vadd.f32 1e-05, %v326_v15 }
 0x183   :  { %1201 = vrsqrt.f32 %v328_v16  ;;  %vm335_vm5 = vweird.f32 %v328_v16 }
 0x189   :  { %v1202_v17 = vpop.eup %1201 }
 0x18a   :  { %v330_v18 = vmul.f32 %v1202_v17, %v328_v16  ;;  %vm336_vm4 = vweird.f32 %v1202_v17 }
 0x18b   :  { %vm337_vm6 = vmor %vm335_vm5, %vm336_vm4 }
 0x18c   :  { %v331_v19 = vmul.f32 %v1202_v17, %v330_v18 }
 0x18e   :  { %v332_v20 = vmul.f32 0.5, %v331_v19 }
 0x190   :  { %v333_v21 = vsub.f32 1.5, %v332_v20  ;;  %v1182_v20 = vld [vmem:[%s1342_s27] ss:$0 sm:$0xff]  ;;  %s1430_s27 = sld [smem:[%s1460_s0 + %s1248_s24]]  }
 0x192   :  { %v334_v22 = vmul.f32 %v1202_v17, %v333_v21 }
 0x194   :  { %v338_v25 = vsel %vm337_vm6, %v1202_v17, %v334_v22 }
 0x195   :  { %v339_v26 = vmul.f32 %v338_v25, %v327_v23  ;;  %v1183_v23 = vld [vmem:[%s1347_s1] ss:$0 sm:$0xff]  ;;  %s1435_s1 = sld [smem:[%s1460_s0 + %s1249_s28]]  }
 0x197   :  { %v344_v28 = vmul.f32 %v1178_v24, %v339_v26 }
 0x199   :  { %v349_v29 = vadd.f32 %v1179_v27, %v344_v28  ;;  %v1125_v27 = vld [vmem:[%s937_s25 + $0x8] sm:$0xff]  ;;  %v1124_v28 = vld [vmem:[%s937_s25] sm:$0xff] }
 0x19a   :  { %633 = vmatpush.bf16.msrb.mxu2 %v1125_v27 }
 0x19b   :  { %v350_v30 = vpack.c.bf16 %v349_v29, %v349_v29  ;;  %v1184_v29 = vld [vmem:[%s1352_s5] ss:$0 sm:$0xff]  ;;  %s1440_s5 = sld [smem:[%s1460_s0 + %s1250_s2]]  }
 0x19d   :  { %1000 = vmatmul.msk.bf16.vlgmr.msra.gmra.mxu2 %vm225_vm0, %v350_v30 }
 0x19e   :  { %634 = vmatpush.bf16.msrb.mxu2 %v1124_v28 }
 0x220   :  { %v383_v40 = vpop.f32.mrf.mxu2 }
 0x221   :  { %v384_v41 = vadd.f32 %v1180_v38, %v383_v40 }
 0x223   :  { %390 = vperm.xlu0 %1172, %v384_v41  }
 0x228   :  { %v385_v42 = vpop.f32.mrf.mxu2 }
 0x295   :  { %v1331_v46 = vpop.permute.xlu0 %390 }
 0x296   :  { %v1335_v47 = vsel %vm394_vm7, %v1331_v46, %v1269_v8  ;;  %v1123_v8 = vld [vmem:[%s933_s9 + $0x8] sm:$0xff]  ;;  %s947_s9 = sld [smem:[%s1460_s0 + %s1251_s6]]  }
 0x297   :  { %v396_v48 = vpack.c.bf16 %v1335_v47, %v1335_v47  ;;  %552 = vmatpush.bf16.msra.mxu1 %v1123_v8 }
 0x299   :  { %473 = vmatmul.bf16.vlgmr.msrb.gmra.mxu3 %v396_v48 }
 0x29b   :  { %553 = vmatpush.bf16.msra.mxu1 %v1122_v49 }
 0x31c   :  { %v474_v51 = vpop.f32.mrf.mxu3 }
 0x31d   :  { %v475_v52 = vadd.f32 %v1181_v50, %v474_v51 }
 0x31f   :  { %1203 = vtanh.f32 %v475_v52 }
 0x324   :  { %v476_v53 = vpop.f32.mrf.mxu3 }
 0x325   :  { %v1204_v54 = vpop.eup %1203 }
 0x326   :  { %v479_v55 = vsel %vm225_vm0, %v1204_v54, 0.0  ;;  %v487_v56 = vmul.f32 %v1204_v54, %v1204_v54 }
 0x327   :  { %v480_v57 = vrot.slane %v479_v55, 4 }
 0x328   :  { %v488_v58 = vsel %vm225_vm0, %v487_v56, 0.0 }
 0x329   :  { %v489_v59 = vrot.slane %v488_v58, 4  ;;  %v481_v60 = vadd.f32 %v480_v57, %v479_v55 }
 0x32b   :  { %v490_v61 = vadd.f32 %v489_v59, %v488_v58  ;;  %v482_v62 = vrot.slane %v481_v60, 2 }
 0x32d   :  { %v491_v63 = vrot.slane %v490_v61, 2  ;;  %v483_v0 = vadd.f32 %v482_v62, %v481_v60 }
 0x32f   :  { %v484_v1 = vrot.slane %v483_v0, 1  ;;  %v492_v2 = vadd.f32 %v491_v63, %v490_v61 }
 0x331   :  { %v485_v3 = vadd.f32 %v484_v1, %v483_v0  ;;  %v493_v4 = vrot.slane %v492_v2, 1  ;;  %v1185_v0 = vld [vmem:[%s1365_s13] ss:$0 sm:$0xff]  ;;  %s949_s13 = sld [smem:[%s1460_s0 + %s1252_s10]]  }
 0x333   :  { %v486_v5 = vmul.f32 0.125, %v485_v3  ;;  %v494_v6 = vadd.f32 %v493_v4, %v492_v2  ;;  %v1186_v3 = vld [vmem:[%s1370_s17] ss:$0 sm:$0xff] }
 0x335   :  { %v495_v7 = vmul.f32 0.125, %v494_v6  ;;  %v496_v9 = vmul.f32 %v486_v5, %v486_v5  ;;  %v499_v19 = vsub.f32 %v1204_v54, %v486_v5 }
 0x337   :  { %v497_v10 = vsub.f32 %v495_v7, %v496_v9  ;;  %v1187_v7 = vld [vmem:[%s1375_s21] ss:$0 sm:$0xff] }
 0x339   :  { %v498_v11 = vmax.f32 %v497_v10, 0.0 }
 0x33b   :  { %v500_v12 = vadd.f32 1e-05, %v498_v11 }
 0x33d   :  { %1205 = vrsqrt.f32 %v500_v12  ;;  %vm507_vm9 = vweird.f32 %v500_v12 }
 0x343   :  { %v1206_v13 = vpop.eup %1205 }
 0x344   :  { %v502_v14 = vmul.f32 %v1206_v13, %v500_v12  ;;  %vm508_vm8 = vweird.f32 %v1206_v13 }
 0x345   :  { %vm509_vm10 = vmor %vm507_vm9, %vm508_vm8 }
 0x346   :  { %v503_v15 = vmul.f32 %v1206_v13, %v502_v14  ;;  %v1132_v14 = vld [vmem:[%s939_s3 + $0x30] sm:$0xff] }
 0x348   :  { %v504_v16 = vmul.f32 0.5, %v503_v15  ;;  %v1131_v15 = vld [vmem:[%s939_s3 + $0x28] sm:$0xff] }
 0x34a   :  { %v505_v17 = vsub.f32 1.5, %v504_v16  ;;  %v1130_v16 = vld [vmem:[%s939_s3 + $0x20] sm:$0xff] }
 0x34c   :  { %v506_v18 = vmul.f32 %v1206_v13, %v505_v17  ;;  %v1129_v17 = vld [vmem:[%s939_s3 + $0x18] sm:$0xff] }
 0x34e   :  { %v510_v21 = vsel %vm509_vm10, %v1206_v13, %v506_v18  ;;  %v1133_v13 = vld [vmem:[%s939_s3 + $0x38] sm:$0xff]  ;;  %v1128_v18 = vld [vmem:[%s939_s3 + $0x10] sm:$0xff] }
 0x34f   :  { %v511_v22 = vmul.f32 %v510_v21, %v499_v19  ;;  %728 = vmatpush.bf16.msrb.mxu1 %v1133_v13  ;;  %v140_v19 = vcvt.s32.f32 %v1328_v45 }
 0x351   :  { %v516_v24 = vmul.f32 %v1182_v20, %v511_v22  ;;  %v1127_v22 = vld [vmem:[%s939_s3 + $0x8] sm:$0xff] }
 0x353   :  { %v521_v25 = vadd.f32 %v1183_v23, %v516_v24  ;;  %729 = vmatpush.bf16.msrb.mxu1 %v1132_v14  ;;  %v1126_v23 = vld [vmem:[%s939_s3] sm:$0xff] }
 0x355   :  { %v522_v26 = vpack.c.bf16 %v521_v25, %v521_v25 }
 0x357   :  { %1041 = vmatmul.msk.bf16.vlgmr.msra.gmra.mxu1 %vm225_vm0, %v522_v26  ;;  %v1243_v26 = vmov 0.0  }
 0x358   :  { %730 = vmatpush.bf16.msrb.mxu1 %v1131_v15 }
 0x35c   :  { %731 = vmatpush.bf16.msrb.mxu1 %v1130_v16 }
 0x360   :  { %732 = vmatpush.bf16.msrb.mxu1 %v1129_v17 }
 0x364   :  { %733 = vmatpush.bf16.msrb.mxu1 %v1128_v18 }
 0x368   :  { %734 = vmatpush.bf16.msrb.mxu1 %v1127_v22 }
 0x36c   :  { %735 = vmatpush.bf16.msrb.mxu1 %v1126_v23 }
 0x3d4   :  { %v555_v30 = vpop.f32.mrf.mxu1 }
 0x3d5   :  { %v556_v31 = vadd.f32 %v1184_v29, %v555_v30 }
 0x3d7   :  { %1207 = vtanh.f32 %v556_v31 }
 0x3dc   :  { %v557_v32 = vpop.f32.mrf.mxu1 }
 0x3dd   :  { %v1208_v33 = vpop.eup %1207  ;;  %v1135_v32 = vld [vmem:[%s943_s23 + $0x8] sm:$0xff] }
 0x3de   :  { %v560_v34 = vsel %vm225_vm0, %v1208_v33, 0.0  ;;  %v568_v35 = vmul.f32 %v1208_v33, %v1208_v33  ;;  %815 = vmatpush.bf16.msra.mxu2 %v1135_v32 }
 0x3df   :  { %v561_v36 = vrot.slane %v560_v34, 4 }
 0x3e0   :  { %v569_v37 = vsel %vm225_vm0, %v568_v35, 0.0 }
 0x3e1   :  { %v562_v38 = vadd.f32 %v561_v36, %v560_v34  ;;  %v570_v39 = vrot.slane %v569_v37, 4 }
 0x3e3   :  { %v563_v40 = vrot.slane %v562_v38, 2  ;;  %v571_v41 = vadd.f32 %v570_v39, %v569_v37 }
 0x3e5   :  { %v572_v42 = vrot.slane %v571_v41, 2  ;;  %v564_v43 = vadd.f32 %v563_v40, %v562_v38 }
 0x3e7   :  { %v573_v44 = vadd.f32 %v572_v42, %v571_v41  ;;  %v565_v48 = vrot.slane %v564_v43, 1 }
 0x3e9   :  { %v574_v8 = vrot.slane %v573_v44, 1  ;;  %v566_v49 = vadd.f32 %v565_v48, %v564_v43 }
 0x3eb   :  { %v567_v50 = vmul.f32 0.125, %v566_v49  ;;  %v575_v51 = vadd.f32 %v574_v8, %v573_v44 }
 0x3ed   :  { %v576_v52 = vmul.f32 0.125, %v575_v51  ;;  %v577_v53 = vmul.f32 %v567_v50, %v567_v50  ;;  %v580_v63 = vsub.f32 %v1208_v33, %v567_v50  ;;  %v1134_v33 = vld [vmem:[%s943_s23] sm:$0xff] }
 0x3ee   :  { %816 = vmatpush.bf16.msra.mxu2 %v1134_v33 }
 0x3ef   :  { %v578_v54 = vsub.f32 %v576_v52, %v577_v53 }
 0x3f1   :  { %v579_v55 = vmax.f32 %v578_v54, 0.0 }
 0x3f3   :  { %v581_v56 = vadd.f32 1e-05, %v579_v55 }
 0x3f5   :  { %1209 = vrsqrt.f32 %v581_v56  ;;  %vm588_vm12 = vweird.f32 %v581_v56 }
 0x3fb   :  { %v1210_v57 = vpop.eup %1209 }
 0x3fc   :  { %v583_v58 = vmul.f32 %v1210_v57, %v581_v56  ;;  %vm589_vm11 = vweird.f32 %v1210_v57 }
 0x3fd   :  { %vm590_vm13 = vmor %vm588_vm12, %vm589_vm11  ;;  %vm387_vm11 = vcmp.eq.s32.totalorder %v1328_v45, 0  ;;  %vm649_vm12 = vcmp.eq.s32.totalorder %v1328_v45, 1 }
 0x3fe   :  { %v584_v59 = vmul.f32 %v1210_v57, %v583_v58 }
 0x400   :  { %v585_v60 = vmul.f32 0.5, %v584_v59 }
 0x402   :  { %v586_v61 = vsub.f32 1.5, %v585_v60 }
 0x404   :  { %v587_v62 = vmul.f32 %v1210_v57, %v586_v61 }
 0x406   :  { %v591_v1 = vsel %vm590_vm13, %v1210_v57, %v587_v62  ;;  %vm903_vm13 = vcmp.eq.s32.totalorder %v1328_v45, 2 }
 0x407   :  { %v592_v2 = vmul.f32 %v591_v1, %v580_v63 }
 0x409   :  { %v597_v4 = vmul.f32 %v1185_v0, %v592_v2  ;;  %v1189_v2 = vld [vmem:[%s1407_s11] ss:$0 sm:$0xff] }
 0x40b   :  { %v602_v5 = vadd.f32 %v1186_v3, %v597_v4 }
 0x40d   :  { %v603_v6 = vpack.c.bf16 %v602_v5, %v602_v5  ;;  %v1190_v5 = vld [vmem:[%s1412_s15] ss:$0 sm:$0xff] }
 0x40f   :  { %1050 = vmatmul.msk.bf16.vlgmr.msrb.gmra.mxu2 %vm225_vm0, %v603_v6 }
 0x492   :  { %v636_v9 = vpop.f32.mrf.mxu2 }
 0x493   :  { %v637_v10 = vadd.f32 %v1187_v7, %v636_v9 }
 0x495   :  { %640 = vst [vmem:[%s950_s29] sm:$0xff] %v637_v10  ;;  %v642_v11 = vsel %vm641_vm14, %v637_v10, -inf  ;;  %v1137_v10 = vld [vmem:[%s947_s9 + $0x8] sm:$0xff] }
 0x496   :  { %643 = vmax.xlane.f32.xlu0 %v642_v11  ;;  %896 = vmatpush.bf16.msrb.mxu0 %v1137_v10 }
 0x49a   :  { %v638_v12 = vpop.f32.mrf.mxu2 }
 0x49b   :  { %v1191_v12 = vld [vmem:[%s1417_s19] ss:$0 sm:$0xff] }
 0x509   :  { %v644_v20 = vpop.xlane.xlu0 %643 }
 0x50a   :  { %vm645_vm15 = vcmp.eq.f32.partialorder %v642_v11, %v644_v20  ;;  %v1136_v11 = vld [vmem:[%s947_s9] sm:$0xff] }
 0x50b   :  { %v646_v21 = vsel %vm645_vm15, %v140_v19, 128.0  ;;  %897 = vmatpush.bf16.msrb.mxu0 %v1136_v11 }
 0x50c   :  { %647 = vmin.xlane.f32.xlu1 %v646_v21 }
 0x57f   :  { %v1400_v24 = vpop.xlane.xlu1 %647 }
 0x580   :  { %v654_v25 = vadd.f32 7.0, %v1400_v24 }
 0x582   :  { %vm655_vm4 = vcmp.eq.f32.partialorder %v140_v19, %v654_v25 }
 0x583   :  { %v1051_v27 = vsel %vm655_vm4, 1.0, %v1243_v26 }
 0x584   :  { %v658_v28 = vsel %vm653_vm3, %v1051_v27, %v1335_v47  ;;  %v1188_v47 = vld [vmem:[%s940_s7] ss:$0 sm:$0xff] }
 0x585   :  { %v659_v29 = vpack.c.bf16 %v658_v28, %v658_v28 }
 0x587   :  { %736 = vmatmul.bf16.vlgmr.msrb.gmra.mxu1 %v659_v29 }
 0x604   :  { %v737_v30 = vpop.f32.mrf.mxu1 }
 0x605   :  { %v738_v31 = vadd.f32 %v1188_v47, %v737_v30 }
 0x607   :  { %1211 = vtanh.f32 %v738_v31 }
 0x60c   :  { %v739_v34 = vpop.f32.mrf.mxu1 }
 0x60d   :  { %v1212_v35 = vpop.eup %1211 }
 0x60e   :  { %v742_v36 = vsel %vm225_vm0, %v1212_v35, 0.0  ;;  %v750_v37 = vmul.f32 %v1212_v35, %v1212_v35 }
 0x60f   :  { %v743_v38 = vrot.slane %v742_v36, 4 }
 0x610   :  { %v751_v39 = vsel %vm225_vm0, %v750_v37, 0.0 }
 0x611   :  { %v744_v40 = vadd.f32 %v743_v38, %v742_v36  ;;  %v752_v41 = vrot.slane %v751_v39, 4 }
 0x613   :  { %v745_v42 = vrot.slane %v744_v40, 2  ;;  %v753_v43 = vadd.f32 %v752_v41, %v751_v39 }
 0x615   :  { %v746_v44 = vadd.f32 %v745_v42, %v744_v40  ;;  %v754_v48 = vrot.slane %v753_v43, 2 }
 0x617   :  { %v747_v8 = vrot.slane %v746_v44, 1  ;;  %v755_v49 = vadd.f32 %v754_v48, %v753_v43  ;;  %v1192_v48 = vld [vmem:[%s1430_s27] ss:$0 sm:$0xff] }
 0x619   :  { %v748_v50 = vadd.f32 %v747_v8, %v746_v44  ;;  %v756_v51 = vrot.slane %v755_v49, 1 }
 0x61b   :  { %v749_v52 = vmul.f32 0.125, %v748_v50  ;;  %v757_v53 = vadd.f32 %v756_v51, %v755_v49  ;;  %v1193_v50 = vld [vmem:[%s1435_s1] ss:$0 sm:$0xff] }
 0x61d   :  { %v758_v54 = vmul.f32 0.125, %v757_v53  ;;  %v759_v55 = vmul.f32 %v749_v52, %v749_v52  ;;  %v762_v1 = vsub.f32 %v1212_v35, %v749_v52 }
 0x61f   :  { %v760_v56 = vsub.f32 %v758_v54, %v759_v55  ;;  %v1194_v54 = vld [vmem:[%s1440_s5] ss:$0 sm:$0xff] }
 0x621   :  { %v761_v57 = vmax.f32 %v760_v56, 0.0 }
 0x623   :  { %v763_v58 = vadd.f32 1e-05, %v761_v57 }
 0x625   :  { %1213 = vrsqrt.f32 %v763_v58  ;;  %vm770_vm6 = vweird.f32 %v763_v58 }
 0x62b   :  { %v1214_v59 = vpop.eup %1213 }
 0x62c   :  { %v765_v60 = vmul.f32 %v1214_v59, %v763_v58  ;;  %vm771_vm5 = vweird.f32 %v1214_v59  ;;  %v393_v58 = vsel %vm387_vm11, %v1331_v46, 0.0 }
 0x62d   :  { %vm772_vm7 = vmor %vm770_vm6, %vm771_vm5 }
 0x62e   :  { %v766_v61 = vmul.f32 %v1214_v59, %v765_v60 }
 0x630   :  { %v767_v62 = vmul.f32 0.5, %v766_v61 }
 0x632   :  { %v768_v63 = vsub.f32 1.5, %v767_v62 }
 0x634   :  { %v769_v0 = vmul.f32 %v1214_v59, %v768_v63 }
 0x636   :  { %v773_v3 = vsel %vm772_vm7, %v1214_v59, %v769_v0  ;;  %v650_v59 = vsel %vm649_vm12, %v1400_v24, %v393_v58 }
 0x637   :  { %v774_v4 = vmul.f32 %v773_v3, %v762_v1 }
 0x639   :  { %v779_v6 = vmul.f32 %v1189_v2, %v774_v4 }
 0x63b   :  { %v784_v7 = vadd.f32 %v1190_v5, %v779_v6 }
 0x63d   :  { %v785_v9 = vpack.c.bf16 %v784_v7, %v784_v7 }
 0x63f   :  { %1092 = vmatmul.msk.bf16.vlgmr.msra.gmra.mxu2 %vm225_vm0, %v785_v9 }
 0x6c2   :  { %v818_v13 = vpop.f32.mrf.mxu2 }
 0x6c3   :  { %v819_v14 = vadd.f32 %v1191_v12, %v818_v13 }
 0x6c5   :  { %1215 = vtanh.f32 %v819_v14 }
 0x6ca   :  { %v820_v15 = vpop.f32.mrf.mxu2 }
 0x6cb   :  { %v1216_v16 = vpop.eup %1215 }
 0x6cc   :  { %v823_v17 = vsel %vm225_vm0, %v1216_v16, 0.0  ;;  %v831_v18 = vmul.f32 %v1216_v16, %v1216_v16 }
 0x6cd   :  { %v824_v19 = vrot.slane %v823_v17, 4 }
 0x6ce   :  { %v832_v20 = vsel %vm225_vm0, %v831_v18, 0.0 }
 0x6cf   :  { %v825_v21 = vadd.f32 %v824_v19, %v823_v17  ;;  %v833_v22 = vrot.slane %v832_v20, 4 }
 0x6d1   :  { %v826_v23 = vrot.slane %v825_v21, 2  ;;  %v834_v25 = vadd.f32 %v833_v22, %v832_v20 }
 0x6d3   :  { %v835_v26 = vrot.slane %v834_v25, 2  ;;  %v827_v27 = vadd.f32 %v826_v23, %v825_v21 }
 0x6d5   :  { %v836_v28 = vadd.f32 %v835_v26, %v834_v25  ;;  %v828_v29 = vrot.slane %v827_v27, 1 }
 0x6d7   :  { %v837_v47 = vrot.slane %v836_v28, 1  ;;  %v829_v30 = vadd.f32 %v828_v29, %v827_v27 }
 0x6d9   :  { %v830_v31 = vmul.f32 0.125, %v829_v30  ;;  %v838_v32 = vadd.f32 %v837_v47, %v836_v28 }
 0x6db   :  { %v839_v33 = vmul.f32 0.125, %v838_v32  ;;  %v840_v34 = vmul.f32 %v830_v31, %v830_v31  ;;  %v843_v44 = vsub.f32 %v1216_v16, %v830_v31 }
 0x6dd   :  { %v841_v35 = vsub.f32 %v839_v33, %v840_v34 }
 0x6df   :  { %v842_v36 = vmax.f32 %v841_v35, 0.0 }
 0x6e1   :  { %v844_v37 = vadd.f32 1e-05, %v842_v36 }
 0x6e3   :  { %1217 = vrsqrt.f32 %v844_v37  ;;  %vm851_vm9 = vweird.f32 %v844_v37 }
 0x6e9   :  { %v1218_v38 = vpop.eup %1217 }
 0x6ea   :  { %v846_v39 = vmul.f32 %v1218_v38, %v844_v37  ;;  %vm852_vm8 = vweird.f32 %v1218_v38 }
 0x6eb   :  { %vm853_vm10 = vmor %vm851_vm9, %vm852_vm8 }
 0x6ec   :  { %v847_v40 = vmul.f32 %v1218_v38, %v846_v39 }
 0x6ee   :  { %v848_v41 = vmul.f32 0.5, %v847_v40 }
 0x6f0   :  { %v849_v42 = vsub.f32 1.5, %v848_v41 }
 0x6f2   :  { %v850_v43 = vmul.f32 %v1218_v38, %v849_v42 }
 0x6f4   :  { %v854_v8 = vsel %vm853_vm10, %v1218_v38, %v850_v43 }
 0x6f5   :  { %v855_v49 = vmul.f32 %v854_v8, %v843_v44 }
 0x6f7   :  { %v860_v51 = vmul.f32 %v1192_v48, %v855_v49 }
 0x6f9   :  { %v865_v52 = vadd.f32 %v1193_v50, %v860_v51 }
 0x6fb   :  { %v866_v53 = vpack.c.bf16 %v865_v52, %v865_v52 }
 0x6fd   :  { %1101 = vmatmul.msk.bf16.vlgmr.msrb.gmra.mxu0 %vm225_vm0, %v866_v53 }
 0x77a   :  { %v899_v55 = vpop.f32.mrf.mxu0 }
 0x77b   :  { %v900_v56 = vadd.f32 %v1194_v54, %v899_v55 }
 0x77d   :  { %906 = vperm.xlu1 %1173, %v900_v56  }
 0x782   :  { %v901_v57 = vpop.f32.mrf.mxu0 }
 0x7ef   :  { %v907_v60 = vpop.permute.xlu1 %906 }
 0x7f0   :  { %v909_v61 = vsel %vm903_vm13, %v907_v60, %v650_v59 }
 0x7f1   :  { %910 = vst [vmem:[%s949_s13] sm:$0xff] %v909_v61 }

</bundles_post_ra>
